<compile_context>
chip_gen: v6e
topology: v6e:2x2x1
jax: 0.10.0
libtpu: 0.0.40
codegen_flags: <defaults>
</compile_context>

<pallas_src>
import functools
import math

import jax
import jax.numpy as jnp
import numpy as np
from jax import lax
from jax.experimental import pallas as pl
from jax.experimental.pallas import tpu as pltpu

BN_EPS = 1e-5
LN_EPS = 1e-5
_SQRT_2_OVER_PI = 0.7978845608028654

# Parameter order consumed by the kernel (fully folded, weights bf16, biases f32).
PARAM_ORDER = ["w0", "b0", "w1", "b1", "w2", "b2", "w3", "b3", "w_out", "b_out"]


def _round_up(n, m):
    return ((n + m - 1) // m) * m


def _device_kind():
    try:
        return jax.devices()[0].device_kind.lower()
    except Exception:
        return ""


def _default_elementwise_dtype():
    # bf16 VPU/EUP exist on v6e and v7x; v5e (and older) would pay widen/narrow casts.
    kind = _device_kind()
    if ("v6" in kind) or ("v7" in kind) or ("7x" in kind):
        return jnp.bfloat16
    return jnp.float32


def _num_tensorcores():
    kind = _device_kind()
    return 2 if (("v7" in kind) or ("7x" in kind)) else 1


def _gelu_tanh(x):
    # tanh-form GELU: transcendental goes to the (otherwise idle) EUP, far fewer VALU
    # ops than the erf polynomial.  Max deviation from exact erf-GELU ~3e-3.
    return 0.5 * x * (1.0 + jnp.tanh(_SQRT_2_OVER_PI * (x + 0.044715 * (x * x * x))))


def meta_learner_kernel(x_ref,
                        w0, b0,
                        w1, b1, w2, b2, w3, b3,
                        w_out, b_out,
                        out_ref, *, compute_dtype):
    # Cast the (bb, d_in) tile in-kernel (cheap) instead of a wrapper-side HBM pass.
    x = x_ref[...].astype(jnp.bfloat16)

    # input_proj and the seq_len==1 attention (softmax over one key == 1, so
    # attn == out_proj(v_proj(.))) are pre-folded into one matmul: x @ w0 + b0.
    h = jnp.dot(x, w0[...], preferred_element_type=jnp.float32) + b0[...]

    def block(h, w, b):
        # Linear with eval-mode BatchNorm AND the previous LayerNorm affine already
        # folded into (w, b) at prep time.
        y = jnp.dot(h.astype(jnp.bfloat16), w[...],
                    preferred_element_type=jnp.float32) + b[...]
        # GELU in bf16 on v6e/v7x (packed sublanes halve the VALU vreg-ops), f32 on v5e.
        g = _gelu_tanh(y.astype(compute_dtype)).astype(jnp.float32)
        # Single-pass LayerNorm stats in f32: var = E[g^2] - E[g]^2.  Post-GELU
        # activations are O(1) here so cancellation risk is negligible.
        mu = jnp.mean(g, axis=-1, keepdims=True)
        ms = jnp.mean(g * g, axis=-1, keepdims=True)
        inv = lax.rsqrt(ms - mu * mu + LN_EPS)
        # Affine (g,c) folded into the next linear; return bf16 ready for the next MXU op.
        return ((g - mu) * inv).astype(jnp.bfloat16)
        # dropout: identity in eval mode; residual branch never fires (shape mismatch).

    h = block(h, w1, b1)   # 256 -> 192
    h = block(h, w2, b2)   # 192 -> 128
    h = block(h, w3, b3)   # 128 -> 64

    # Output head Linear(64, 1) with ln3 affine folded in, computed transposed so the
    # batch lands on the lane axis -> lane-dense, unmasked stores.
    out_t = lax.dot_general(w_out[...], h, (((1,), (1,)), ((), ())),
                            preferred_element_type=jnp.float32)
    out_ref[...] = out_t + b_out[...]


def meta_learner_forward(x, prep, *, block_b=512, elementwise_dtype=None):
    """x: (B, input_size) f32.  prep: output of prepare_params.  Returns (B, 1) f32."""
    B, d_in = x.shape
    if elementwise_dtype is None:
        elementwise_dtype = _default_elementwise_dtype()

    # Batch tile: big (amortizes ~0.35us per-step overhead), multiple of 128 whenever
    # the grid has more than one step (keeps the lane-dense output block legal).
    block_b = max(128, 128 * (block_b // 128))
    B8 = _round_up(B, 8)
    bb = min(block_b, B8)
    # v7x has 2 TensorCores: make sure the "parallel" grid has >= 2 steps when the
    # batch is big enough to split at 128-row granularity.
    if _num_tensorcores() >= 2 and B8 >= 256:
        bb = min(bb, _round_up(-(-B8 // 2), 128))
    B_pad = _round_up(B, bb)
    if B_pad != B:
        x = jnp.pad(x, ((0, B_pad - B), (0, 0)))     # skipped in the common no-pad case

    param_list = [prep[k] for k in PARAM_ORDER]

    in_specs = [pl.BlockSpec((bb, d_in), lambda i: (i, 0))]
    # Constant-index parameter tiles (~0.35 MiB bf16 total): Mosaic only re-issues a
    # DMA when the block index changes, so these stay VMEM-resident across grid steps.
    in_specs += [pl.BlockSpec(p.shape, lambda i: (0, 0)) for p in param_list]

    kernel = functools.partial(meta_learner_kernel, compute_dtype=elementwise_dtype)

    out_t = pl.pallas_call(
        kernel,
        out_shape=jax.ShapeDtypeStruct((1, B_pad), jnp.float32),
        grid=(B_pad // bb,),
        in_specs=in_specs,
        # Lane-dense output: batch sits on the lane axis -> unmasked stores.
        out_specs=pl.BlockSpec((1, bb), lambda i: (0, i)),
        compiler_params=pltpu.CompilerParams(
            dimension_semantics=("parallel",)),
        # VMEM footprint is a few MiB even at block_b=512 -> default scoped limit is plenty.
    )(x, *param_list)

    return out_t[0, :B, None]


def prepare_params(p):
    """One-time parameter prep (all algebra in f32, weights cast to bf16 ONCE at the end):
       - attention over seq_len==1: out_proj(v_proj(.)) -> Wv @ Wo (exact)
       - input_proj folded into that: w0 = w_in @ (Wv@Wo), b0 = b_in @ (Wv@Wo) + bv@Wo + bo
       - eval-mode BatchNorm1d (running stats) folded into its Linear
       - each LayerNorm affine folded into the NEXT Linear (ln3 -> output head)."""
    # Attention fold.
    w_attn = p["wv"] @ p["wo"]                       # (256, 256)
    b_attn = p["bv"] @ p["wo"] + p["bo"]             # (1, 256)
    # Input-proj fold (no nonlinearity in between -> exact).
    w0 = p["w_in"] @ w_attn                          # (in, 256)
    b0 = p["b_in"] @ w_attn + b_attn                 # (1, 256)

    # BatchNorm folds (per block).
    ws, bs = [], []
    for i in (1, 2, 3):
        scale = p[f"bn{i}_gamma"] * lax.rsqrt(p[f"bn{i}_var"] + BN_EPS)   # (1, dout)
        shift = p[f"bn{i}_beta"] - p[f"bn{i}_mean"] * scale
        ws.append(p[f"w{i}"] * scale)                # scale per out-feature (column)
        bs.append(p[f"b{i}"] * scale + shift)

    # LayerNorm affine folds into the following linear:
    #   h = n*g + c  =>  h @ W + b = n @ (diag(g) W) + (c @ W + b)
    w1, b1 = ws[0], bs[0]
    w2 = ws[1] * p["ln1_g"].reshape(-1, 1)
    b2 = p["ln1_b"] @ ws[1] + bs[1]
    w3 = ws[2] * p["ln2_g"].reshape(-1, 1)
    b3 = p["ln2_b"] @ ws[2] + bs[2]
    # ln3 folds into the output head. w_out is stored torch-style (1, 64) = (out, in).
    w_out = p["w_out"] * p["ln3_g"]                  # (1, 64) row used transposed in-kernel
    b_out = p["ln3_b"] @ p["w_out"].T + p["b_out"]   # (1, 1)

    q = {
        "w0": w0.astype(jnp.bfloat16), "b0": b0.astype(jnp.float32),
        "w1": w1.astype(jnp.bfloat16), "b1": b1.astype(jnp.float32),
        "w2": w2.astype(jnp.bfloat16), "b2": b2.astype(jnp.float32),
        "w3": w3.astype(jnp.bfloat16), "b3": b3.astype(jnp.float32),
        "w_out": w_out.astype(jnp.bfloat16), "b_out": b_out.astype(jnp.float32),
    }
    return q


def _orthogonal(key, n_out, n_in):
    """torch.nn.init.orthogonal_-style init, returned in (n_out, n_in) layout."""
    rows, cols = max(n_out, n_in), min(n_out, n_in)
    a = jax.random.normal(key, (rows, cols), dtype=jnp.float32)
    q, r = jnp.linalg.qr(a)
    q = q * jnp.sign(jnp.diagonal(r))[None, :]
    if n_out < n_in:
        q = q.T
    return q


def init_params(key, input_size):
    """Raw (PyTorch-equivalent, eval-mode) parameters; Linear weights stored as
    (in_features, out_features) except w_out which keeps torch's (out, in)."""
    keys = jax.random.split(key, 8)
    p = {}
    p["w_in"] = _orthogonal(keys[0], 256, input_size).T          # (in, 256)
    p["b_in"] = jnp.zeros((1, 256), jnp.float32)

    # MHA: in_proj value slice keeps torch's xavier_uniform default; out_proj is an
    # nn.Linear -> orthogonal init; all biases 0.
    limit = math.sqrt(6.0 / (256 + 3 * 256))
    p["wv"] = jax.random.uniform(keys[1], (256, 256), jnp.float32, -limit, limit).T
    p["bv"] = jnp.zeros((1, 256), jnp.float32)
    p["wo"] = _orthogonal(keys[2], 256, 256).T
    p["bo"] = jnp.zeros((1, 256), jnp.float32)

    dims = [(256, 192), (192, 128), (128, 64)]
    for i, (din, dout) in enumerate(dims, start=1):
        p[f"w{i}"] = _orthogonal(keys[2 + i], dout, din).T       # (din, dout)
        p[f"b{i}"] = jnp.zeros((1, dout), jnp.float32)
        # BatchNorm1d eval-mode state (fresh module: gamma=1, beta=0, mean=0, var=1).
        p[f"bn{i}_gamma"] = jnp.ones((1, dout), jnp.float32)
        p[f"bn{i}_beta"] = jnp.zeros((1, dout), jnp.float32)
        p[f"bn{i}_mean"] = jnp.zeros((1, dout), jnp.float32)
        p[f"bn{i}_var"] = jnp.ones((1, dout), jnp.float32)
        p[f"ln{i}_g"] = jnp.ones((1, dout), jnp.float32)
        p[f"ln{i}_b"] = jnp.zeros((1, dout), jnp.float32)

    p["w_out"] = _orthogonal(keys[6], 1, 64)                     # (1, 64)
    p["b_out"] = jnp.zeros((1, 1), jnp.float32)
    return p


def reference_forward(x, p):
    """Pure-JAX f32 reference matching the eval-mode PyTorch forward (unfolded
    attention, general BatchNorm formula, exact erf GELU, two-pass LayerNorm)."""
    h = x @ p["w_in"] + p["b_in"]
    v = h @ p["wv"] + p["bv"]
    h = v @ p["wo"] + p["bo"]
    for i in (1, 2, 3):
        y = h @ p[f"w{i}"] + p[f"b{i}"]
        y = (y - p[f"bn{i}_mean"]) / jnp.sqrt(p[f"bn{i}_var"] + BN_EPS) \
            * p[f"bn{i}_gamma"] + p[f"bn{i}_beta"]
        y = jax.nn.gelu(y, approximate=False)
        mu = y.mean(-1, keepdims=True)
        var = ((y - mu) ** 2).mean(-1, keepdims=True)
        h = (y - mu) / jnp.sqrt(var + LN_EPS) * p[f"ln{i}_g"] + p[f"ln{i}_b"]
    return h @ p["w_out"].T + p["b_out"]


if __name__ == "__main__":
    key = jax.random.PRNGKey(0)
    k_param, k_x = jax.random.split(key)

    input_size = 32
    batch = 16
    params = init_params(k_param, input_size)
    prep = prepare_params(params)
    x = jax.random.normal(k_x, (batch, input_size), dtype=jnp.float32)

    out = jax.jit(meta_learner_forward)(x, prep)
    out = jax.block_until_ready(out)

    assert out.shape == (batch, 1)
    ref = reference_forward(x, params)
    np.testing.assert_allclose(np.asarray(out), np.asarray(ref), atol=5e-2, rtol=5e-2)

    print("KERNEL_OK")
</pallas_src>

<mosaic_0001>
module attributes {stable_mosaic.version = 11 : i64} {
  func.func @meta_learner_kernel(%arg0: i32, %arg1: memref<16x32xf32, #tpu.memory_space<vmem>>, %arg2: memref<32x256xbf16, #tpu.memory_space<vmem>>, %arg3: memref<1x256xf32, #tpu.memory_space<vmem>>, %arg4: memref<256x192xbf16, #tpu.memory_space<vmem>>, %arg5: memref<1x192xf32, #tpu.memory_space<vmem>>, %arg6: memref<192x128xbf16, #tpu.memory_space<vmem>>, %arg7: memref<1x128xf32, #tpu.memory_space<vmem>>, %arg8: memref<128x64xbf16, #tpu.memory_space<vmem>>, %arg9: memref<1x64xf32, #tpu.memory_space<vmem>>, %arg10: memref<1x64xbf16, #tpu.memory_space<vmem>>, %arg11: memref<1x1xf32, #tpu.memory_space<vmem>>, %arg12: memref<1x16xf32, #tpu.memory_space<vmem>>) attributes {dimension_semantics = [#tpu.dimension_semantics<parallel>], iteration_bounds = array<i64: 1>, scalar_prefetch = 0 : i64, scratch_operands = 0 : i64, tpu.core_type = #tpu.core_type<tc>, window_params = [{transform_indices = @transform_0, window_bounds = array<i64: 16, 32>}, {pipeline_mode = #tpu.pipeline_mode<synchronous>, transform_indices = @transform_1, window_bounds = array<i64: 32, 256>}, {pipeline_mode = #tpu.pipeline_mode<synchronous>, transform_indices = @transform_2, window_bounds = array<i64: 1, 256>}, {pipeline_mode = #tpu.pipeline_mode<synchronous>, transform_indices = @transform_3, window_bounds = array<i64: 256, 192>}, {pipeline_mode = #tpu.pipeline_mode<synchronous>, transform_indices = @transform_4, window_bounds = array<i64: 1, 192>}, {pipeline_mode = #tpu.pipeline_mode<synchronous>, transform_indices = @transform_5, window_bounds = array<i64: 192, 128>}, {pipeline_mode = #tpu.pipeline_mode<synchronous>, transform_indices = @transform_6, window_bounds = array<i64: 1, 128>}, {pipeline_mode = #tpu.pipeline_mode<synchronous>, transform_indices = @transform_7, window_bounds = array<i64: 128, 64>}, {pipeline_mode = #tpu.pipeline_mode<synchronous>, transform_indices = @transform_8, window_bounds = array<i64: 1, 64>}, {pipeline_mode = #tpu.pipeline_mode<synchronous>, transform_indices = @transform_9, window_bounds = array<i64: 1, 64>}, {pipeline_mode = #tpu.pipeline_mode<synchronous>, transform_indices = @transform_10, window_bounds = array<i64: 1, 1>}, {transform_indices = @transform_11, window_bounds = array<i64: 1, 16>}]} {
    %c0 = arith.constant 0 : index
    %c0_0 = arith.constant 0 : index
    %0 = vector.load %arg1[%c0, %c0_0] : memref<16x32xf32, #tpu.memory_space<vmem>>, vector<16x32xf32>
    %1 = arith.truncf %0 : vector<16x32xf32> to vector<16x32xbf16>
    %c0_1 = arith.constant 0 : index
    %c0_2 = arith.constant 0 : index
    %2 = vector.load %arg2[%c0_1, %c0_2] : memref<32x256xbf16, #tpu.memory_space<vmem>>, vector<32x256xbf16>
    %cst = arith.constant dense<0.000000e+00> : vector<16x256xf32>
    %3 = tpu.matmul %1, %2, %cst {dimension_numbers = #tpu.dot_dimension_numbers<[1], [0], [0], [1], [0, 0, 1, 1], [], []>} : vector<16x32xbf16>, vector<32x256xbf16>, vector<16x256xf32> -> vector<16x256xf32>
    %c0_3 = arith.constant 0 : index
    %c0_4 = arith.constant 0 : index
    %4 = vector.load %arg3[%c0_3, %c0_4] : memref<1x256xf32, #tpu.memory_space<vmem>>, vector<1x256xf32>
    %5 = vector.broadcast %4 : vector<1x256xf32> to vector<16x256xf32>
    %6 = arith.addf %3, %5 : vector<16x256xf32>
    %7 = arith.truncf %6 : vector<16x256xf32> to vector<16x256xbf16>
    %c0_5 = arith.constant 0 : index
    %c0_6 = arith.constant 0 : index
    %8 = vector.load %arg4[%c0_5, %c0_6] : memref<256x192xbf16, #tpu.memory_space<vmem>>, vector<256x192xbf16>
    %cst_7 = arith.constant dense<0.000000e+00> : vector<16x192xf32>
    %9 = tpu.matmul %7, %8, %cst_7 {dimension_numbers = #tpu.dot_dimension_numbers<[1], [0], [0], [1], [0, 0, 1, 1], [], []>} : vector<16x256xbf16>, vector<256x192xbf16>, vector<16x192xf32> -> vector<16x192xf32>
    %c0_8 = arith.constant 0 : index
    %c0_9 = arith.constant 0 : index
    %10 = vector.load %arg5[%c0_8, %c0_9] : memref<1x192xf32, #tpu.memory_space<vmem>>, vector<1x192xf32>
    %11 = vector.broadcast %10 : vector<1x192xf32> to vector<16x192xf32>
    %12 = arith.addf %9, %11 : vector<16x192xf32>
    %cst_10 = arith.constant 5.000000e-01 : f32
    %13 = vector.broadcast %cst_10 : f32 to vector<16x192xf32>
    %14 = arith.mulf %13, %12 : vector<16x192xf32>
    %15 = arith.mulf %12, %12 : vector<16x192xf32>
    %16 = arith.mulf %15, %12 : vector<16x192xf32>
    %cst_11 = arith.constant 4.471500e-02 : f32
    %17 = vector.broadcast %cst_11 : f32 to vector<16x192xf32>
    %18 = arith.mulf %17, %16 : vector<16x192xf32>
    %19 = arith.addf %12, %18 : vector<16x192xf32>
    %cst_12 = arith.constant 0.797884583 : f32
    %20 = vector.broadcast %cst_12 : f32 to vector<16x192xf32>
    %21 = arith.mulf %20, %19 : vector<16x192xf32>
    %22 = math.tanh %21 : vector<16x192xf32>
    %cst_13 = arith.constant 1.000000e+00 : f32
    %23 = vector.broadcast %cst_13 : f32 to vector<16x192xf32>
    %24 = arith.addf %23, %22 : vector<16x192xf32>
    %25 = arith.mulf %14, %24 : vector<16x192xf32>
    %cst_14 = arith.constant dense<0.000000e+00> : vector<16xf32>
    %26 = vector.multi_reduction <add>, %25, %cst_14 [1] : vector<16x192xf32> to vector<16xf32>
    %27 = vector.shape_cast %26 : vector<16xf32> to vector<16x1xf32>
    %cst_15 = arith.constant 1.920000e+02 : f32
    %28 = vector.broadcast %cst_15 : f32 to vector<16x1xf32>
    %29 = arith.divf %27, %28 : vector<16x1xf32>
    %30 = arith.mulf %25, %25 : vector<16x192xf32>
    %cst_16 = arith.constant dense<0.000000e+00> : vector<16xf32>
    %31 = vector.multi_reduction <add>, %30, %cst_16 [1] : vector<16x192xf32> to vector<16xf32>
    %32 = vector.shape_cast %31 : vector<16xf32> to vector<16x1xf32>
    %cst_17 = arith.constant 1.920000e+02 : f32
    %33 = vector.broadcast %cst_17 : f32 to vector<16x1xf32>
    %34 = arith.divf %32, %33 : vector<16x1xf32>
    %35 = arith.mulf %29, %29 : vector<16x1xf32>
    %36 = arith.subf %34, %35 : vector<16x1xf32>
    %cst_18 = arith.constant 9.99999974E-6 : f32
    %37 = vector.broadcast %cst_18 : f32 to vector<16x1xf32>
    %38 = arith.addf %36, %37 : vector<16x1xf32>
    %39 = math.rsqrt %38 : vector<16x1xf32>
    %40 = vector.broadcast %29 : vector<16x1xf32> to vector<16x192xf32>
    %41 = arith.subf %25, %40 : vector<16x192xf32>
    %42 = vector.broadcast %39 : vector<16x1xf32> to vector<16x192xf32>
    %43 = arith.mulf %41, %42 : vector<16x192xf32>
    %44 = arith.truncf %43 : vector<16x192xf32> to vector<16x192xbf16>
    %c0_19 = arith.constant 0 : index
    %c0_20 = arith.constant 0 : index
    %45 = vector.load %arg6[%c0_19, %c0_20] : memref<192x128xbf16, #tpu.memory_space<vmem>>, vector<192x128xbf16>
    %cst_21 = arith.constant dense<0.000000e+00> : vector<16x128xf32>
    %46 = tpu.matmul %44, %45, %cst_21 {dimension_numbers = #tpu.dot_dimension_numbers<[1], [0], [0], [1], [0, 0, 1, 1], [], []>} : vector<16x192xbf16>, vector<192x128xbf16>, vector<16x128xf32> -> vector<16x128xf32>
    %c0_22 = arith.constant 0 : index
    %c0_23 = arith.constant 0 : index
    %47 = vector.load %arg7[%c0_22, %c0_23] : memref<1x128xf32, #tpu.memory_space<vmem>>, vector<1x128xf32>
    %48 = vector.broadcast %47 : vector<1x128xf32> to vector<16x128xf32>
    %49 = arith.addf %46, %48 : vector<16x128xf32>
    %cst_24 = arith.constant 5.000000e-01 : f32
    %50 = vector.broadcast %cst_24 : f32 to vector<16x128xf32>
    %51 = arith.mulf %50, %49 : vector<16x128xf32>
    %52 = arith.mulf %49, %49 : vector<16x128xf32>
    %53 = arith.mulf %52, %49 : vector<16x128xf32>
    %cst_25 = arith.constant 4.471500e-02 : f32
    %54 = vector.broadcast %cst_25 : f32 to vector<16x128xf32>
    %55 = arith.mulf %54, %53 : vector<16x128xf32>
    %56 = arith.addf %49, %55 : vector<16x128xf32>
    %cst_26 = arith.constant 0.797884583 : f32
    %57 = vector.broadcast %cst_26 : f32 to vector<16x128xf32>
    %58 = arith.mulf %57, %56 : vector<16x128xf32>
    %59 = math.tanh %58 : vector<16x128xf32>
    %cst_27 = arith.constant 1.000000e+00 : f32
    %60 = vector.broadcast %cst_27 : f32 to vector<16x128xf32>
    %61 = arith.addf %60, %59 : vector<16x128xf32>
    %62 = arith.mulf %51, %61 : vector<16x128xf32>
    %cst_28 = arith.constant dense<0.000000e+00> : vector<16xf32>
    %63 = vector.multi_reduction <add>, %62, %cst_28 [1] : vector<16x128xf32> to vector<16xf32>
    %64 = vector.shape_cast %63 : vector<16xf32> to vector<16x1xf32>
    %cst_29 = arith.constant 1.280000e+02 : f32
    %65 = vector.broadcast %cst_29 : f32 to vector<16x1xf32>
    %66 = arith.divf %64, %65 : vector<16x1xf32>
    %67 = arith.mulf %62, %62 : vector<16x128xf32>
    %cst_30 = arith.constant dense<0.000000e+00> : vector<16xf32>
    %68 = vector.multi_reduction <add>, %67, %cst_30 [1] : vector<16x128xf32> to vector<16xf32>
    %69 = vector.shape_cast %68 : vector<16xf32> to vector<16x1xf32>
    %cst_31 = arith.constant 1.280000e+02 : f32
    %70 = vector.broadcast %cst_31 : f32 to vector<16x1xf32>
    %71 = arith.divf %69, %70 : vector<16x1xf32>
    %72 = arith.mulf %66, %66 : vector<16x1xf32>
    %73 = arith.subf %71, %72 : vector<16x1xf32>
    %cst_32 = arith.constant 9.99999974E-6 : f32
    %74 = vector.broadcast %cst_32 : f32 to vector<16x1xf32>
    %75 = arith.addf %73, %74 : vector<16x1xf32>
    %76 = math.rsqrt %75 : vector<16x1xf32>
    %77 = vector.broadcast %66 : vector<16x1xf32> to vector<16x128xf32>
    %78 = arith.subf %62, %77 : vector<16x128xf32>
    %79 = vector.broadcast %76 : vector<16x1xf32> to vector<16x128xf32>
    %80 = arith.mulf %78, %79 : vector<16x128xf32>
    %81 = arith.truncf %80 : vector<16x128xf32> to vector<16x128xbf16>
    %c0_33 = arith.constant 0 : index
    %c0_34 = arith.constant 0 : index
    %82 = vector.load %arg8[%c0_33, %c0_34] : memref<128x64xbf16, #tpu.memory_space<vmem>>, vector<128x64xbf16>
    %cst_35 = arith.constant dense<0.000000e+00> : vector<16x64xf32>
    %83 = tpu.matmul %81, %82, %cst_35 {dimension_numbers = #tpu.dot_dimension_numbers<[1], [0], [0], [1], [0, 0, 1, 1], [], []>} : vector<16x128xbf16>, vector<128x64xbf16>, vector<16x64xf32> -> vector<16x64xf32>
    %c0_36 = arith.constant 0 : index
    %c0_37 = arith.constant 0 : index
    %84 = vector.load %arg9[%c0_36, %c0_37] : memref<1x64xf32, #tpu.memory_space<vmem>>, vector<1x64xf32>
    %85 = vector.broadcast %84 : vector<1x64xf32> to vector<16x64xf32>
    %86 = arith.addf %83, %85 : vector<16x64xf32>
    %cst_38 = arith.constant 5.000000e-01 : f32
    %87 = vector.broadcast %cst_38 : f32 to vector<16x64xf32>
    %88 = arith.mulf %87, %86 : vector<16x64xf32>
    %89 = arith.mulf %86, %86 : vector<16x64xf32>
    %90 = arith.mulf %89, %86 : vector<16x64xf32>
    %cst_39 = arith.constant 4.471500e-02 : f32
    %91 = vector.broadcast %cst_39 : f32 to vector<16x64xf32>
    %92 = arith.mulf %91, %90 : vector<16x64xf32>
    %93 = arith.addf %86, %92 : vector<16x64xf32>
    %cst_40 = arith.constant 0.797884583 : f32
    %94 = vector.broadcast %cst_40 : f32 to vector<16x64xf32>
    %95 = arith.mulf %94, %93 : vector<16x64xf32>
    %96 = math.tanh %95 : vector<16x64xf32>
    %cst_41 = arith.constant 1.000000e+00 : f32
    %97 = vector.broadcast %cst_41 : f32 to vector<16x64xf32>
    %98 = arith.addf %97, %96 : vector<16x64xf32>
    %99 = arith.mulf %88, %98 : vector<16x64xf32>
    %cst_42 = arith.constant dense<0.000000e+00> : vector<16xf32>
    %100 = vector.multi_reduction <add>, %99, %cst_42 [1] : vector<16x64xf32> to vector<16xf32>
    %101 = vector.shape_cast %100 : vector<16xf32> to vector<16x1xf32>
    %cst_43 = arith.constant 6.400000e+01 : f32
    %102 = vector.broadcast %cst_43 : f32 to vector<16x1xf32>
    %103 = arith.divf %101, %102 : vector<16x1xf32>
    %104 = arith.mulf %99, %99 : vector<16x64xf32>
    %cst_44 = arith.constant dense<0.000000e+00> : vector<16xf32>
    %105 = vector.multi_reduction <add>, %104, %cst_44 [1] : vector<16x64xf32> to vector<16xf32>
    %106 = vector.shape_cast %105 : vector<16xf32> to vector<16x1xf32>
    %cst_45 = arith.constant 6.400000e+01 : f32
    %107 = vector.broadcast %cst_45 : f32 to vector<16x1xf32>
    %108 = arith.divf %106, %107 : vector<16x1xf32>
    %109 = arith.mulf %103, %103 : vector<16x1xf32>
    %110 = arith.subf %108, %109 : vector<16x1xf32>
    %cst_46 = arith.constant 9.99999974E-6 : f32
    %111 = vector.broadcast %cst_46 : f32 to vector<16x1xf32>
    %112 = arith.addf %110, %111 : vector<16x1xf32>
    %113 = math.rsqrt %112 : vector<16x1xf32>
    %114 = vector.broadcast %103 : vector<16x1xf32> to vector<16x64xf32>
    %115 = arith.subf %99, %114 : vector<16x64xf32>
    %116 = vector.broadcast %113 : vector<16x1xf32> to vector<16x64xf32>
    %117 = arith.mulf %115, %116 : vector<16x64xf32>
    %118 = arith.truncf %117 : vector<16x64xf32> to vector<16x64xbf16>
    %c0_47 = arith.constant 0 : index
    %c0_48 = arith.constant 0 : index
    %119 = vector.load %arg10[%c0_47, %c0_48] : memref<1x64xbf16, #tpu.memory_space<vmem>>, vector<1x64xbf16>
    %cst_49 = arith.constant dense<0.000000e+00> : vector<1x16xf32>
    %120 = tpu.matmul %119, %118, %cst_49 {dimension_numbers = #tpu.dot_dimension_numbers<[1], [1], [0], [0], [0, 0, 1, 0], [], []>} : vector<1x64xbf16>, vector<16x64xbf16>, vector<1x16xf32> -> vector<1x16xf32>
    %c0_50 = arith.constant 0 : index
    %c0_51 = arith.constant 0 : index
    %121 = vector.load %arg11[%c0_50, %c0_51] : memref<1x1xf32, #tpu.memory_space<vmem>>, vector<1x1xf32>
    %122 = vector.broadcast %121 : vector<1x1xf32> to vector<1x16xf32>
    %123 = arith.addf %120, %122 : vector<1x16xf32>
    %c0_52 = arith.constant 0 : index
    %c0_53 = arith.constant 0 : index
    %124 = vector.load %arg12[%c0_52, %c0_53] : memref<1x16xf32, #tpu.memory_space<vmem>>, vector<1x16xf32>
    tpu.vector_store %arg12[%c0_52, %c0_53], %123 {strides = array<i32>} : memref<1x16xf32, #tpu.memory_space<vmem>>, vector<1x16xf32>,
    return
  }
  func.func @transform_0(%arg0: i32) -> (i32, i32) {
    %c0_i32 = arith.constant 0 : i32
    %c0_i32_0 = arith.constant 0 : i32
    return %arg0, %c0_i32 : i32, i32
  }
  func.func @transform_1(%arg0: i32) -> (i32, i32) {
    %c0_i32 = arith.constant 0 : i32
    %c0_i32_0 = arith.constant 0 : i32
    %c0_i32_1 = arith.constant 0 : i32
    return %c0_i32, %c0_i32_0 : i32, i32
  }
  func.func @transform_2(%arg0: i32) -> (i32, i32) {
    %c0_i32 = arith.constant 0 : i32
    %c0_i32_0 = arith.constant 0 : i32
    %c0_i32_1 = arith.constant 0 : i32
    return %c0_i32, %c0_i32_0 : i32, i32
  }
  func.func @transform_3(%arg0: i32) -> (i32, i32) {
    %c0_i32 = arith.constant 0 : i32
    %c0_i32_0 = arith.constant 0 : i32
    %c0_i32_1 = arith.constant 0 : i32
    return %c0_i32, %c0_i32_0 : i32, i32
  }
  func.func @transform_4(%arg0: i32) -> (i32, i32) {
    %c0_i32 = arith.constant 0 : i32
    %c0_i32_0 = arith.constant 0 : i32
    %c0_i32_1 = arith.constant 0 : i32
    return %c0_i32, %c0_i32_0 : i32, i32
  }
  func.func @transform_5(%arg0: i32) -> (i32, i32) {
    %c0_i32 = arith.constant 0 : i32
    %c0_i32_0 = arith.constant 0 : i32
    %c0_i32_1 = arith.constant 0 : i32
    return %c0_i32, %c0_i32_0 : i32, i32
  }
  func.func @transform_6(%arg0: i32) -> (i32, i32) {
    %c0_i32 = arith.constant 0 : i32
    %c0_i32_0 = arith.constant 0 : i32
    %c0_i32_1 = arith.constant 0 : i32
    return %c0_i32, %c0_i32_0 : i32, i32
  }
  func.func @transform_7(%arg0: i32) -> (i32, i32) {
    %c0_i32 = arith.constant 0 : i32
    %c0_i32_0 = arith.constant 0 : i32
    %c0_i32_1 = arith.constant 0 : i32
    return %c0_i32, %c0_i32_0 : i32, i32
  }
  func.func @transform_8(%arg0: i32) -> (i32, i32) {
    %c0_i32 = arith.constant 0 : i32
    %c0_i32_0 = arith.constant 0 : i32
    %c0_i32_1 = arith.constant 0 : i32
    return %c0_i32, %c0_i32_0 : i32, i32
  }
  func.func @transform_9(%arg0: i32) -> (i32, i32) {
    %c0_i32 = arith.constant 0 : i32
    %c0_i32_0 = arith.constant 0 : i32
    %c0_i32_1 = arith.constant 0 : i32
    return %c0_i32, %c0_i32_0 : i32, i32
  }
  func.func @transform_10(%arg0: i32) -> (i32, i32) {
    %c0_i32 = arith.constant 0 : i32
    %c0_i32_0 = arith.constant 0 : i32
    %c0_i32_1 = arith.constant 0 : i32
    return %c0_i32, %c0_i32_0 : i32, i32
  }
  func.func @transform_11(%arg0: i32) -> (i32, i32) {
    %c0_i32 = arith.constant 0 : i32
    %c0_i32_0 = arith.constant 0 : i32
    return %c0_i32, %arg0 : i32, i32
  }
}

</mosaic_0001>

<bundles_post_ra>
// kernel: meta_learner_forward.1
= control target key start
LH: loop header
LB: loop body
LE: loop exit
PB: predicated region body
PF: predicated region fallthrough
CT: control target
= control target key end

     0   :  { %s1413_s0 = inlined_call_operand.vmem [shape: f32[16,32], index: 0, kind: input, shape index: {}]   ;;  %s1414_s1 = inlined_call_operand.vmem [shape: bf16[32,256], index: 1, kind: input, shape index: {}]   ;;  %s1415_s2 = inlined_call_operand.vmem [shape: f32[1,256], index: 2, kind: input, shape index: {}]   ;;  %s1416_s3 = inlined_call_operand.vmem [shape: bf16[256,192], index: 3, kind: input, shape index: {}]   ;;  %s1417_s4 = inlined_call_operand.vmem [shape: f32[1,192], index: 4, kind: input, shape index: {}]   ;;  %s1418_s5 = inlined_call_operand.vmem [shape: bf16[192,128], index: 5, kind: input, shape index: {}]   ;;  %s1419_s6 = inlined_call_operand.vmem [shape: f32[1,128], index: 6, kind: input, shape index: {}]   ;;  %s1420_s7 = inlined_call_operand.vmem [shape: bf16[128,64], index: 7, kind: input, shape index: {}]   ;;  %s1421_s8 = inlined_call_operand.vmem [shape: f32[1,64], index: 8, kind: input, shape index: {}]   ;;  %s1422_s9 = inlined_call_operand.vmem [shape: bf16[1,64], index: 9, kind: input, shape index: {}]   ;;  %s1423_s10 = inlined_call_operand.<no memory space> [shape: f32[1,1], index: 10, kind: input, shape index: {}]   ;;  %s1424_s11 = inlined_call_operand.hbm [shape: f32[1,16], index: 11, kind: output, shape index: {}]  }
   0x1   :  { %v16_v0 = vstv %s1423_s10 }
   0x2   :  { %17 = vst [vmem:[#allocation2] sm:$0x1] %v16_v0 }
   0x3   :  { %v988_v1 = vld [vmem:[%s1414_s1 + $0x14] ss:$8 sps:$4 sm:$0xff]   ;;  %v990_v2 = vld [vmem:[%s1414_s1 + $0x10] ss:$8 sps:$4 sm:$0xff]   ;;  %v1112_v3 = vmov 0   ;;  %v42_v6 = vld [vmem:[%s1413_s0] sm:$0xff] }
   0x4   :  { %117 = vmatprep.mubr.bf16.mxu1 %v1112_v3  ;;  %563 = vmatprep.subr.bf16.mxu0 %v1112_v3  ;;  %v991_v4 = vld [vmem:[%s1414_s1 + $0x4] ss:$8 sps:$4 sm:$0xff]   ;;  %v993_v5 = vld [vmem:[%s1414_s1] ss:$8 sps:$4 sm:$0xff]   ;;  %v996_v8 = vld [vmem:[%s1416_s3 + $0x74] ss:$8 sps:$4 sm:$0xff]  }
   0x5   :  { %97 = vmatprep.subr.bf16.mxu1 %v988_v1  ;;  %987 = vset.pattern.permute.xlu0 %v1112_v3  ;;  %v43_v7 = vld [vmem:[%s1413_s0 + $0x8] sm:$0xff]  ;;  %vm81_vm0 = vcmask 261120   ;;  %v994_v10 = vld [vmem:[%s1416_s3 + $0x70] ss:$8 sps:$4 sm:$0xff]   ;;  %v1002_v13 = vld [vmem:[%s1416_s3 + $0x54] ss:$8 sps:$4 sm:$0xff]  }
   0x6   :  { %98 = vmatpush1.bf16.msra.mxu1 %v990_v2  ;;  %v44_v9 = vpack.c.bf16 %v43_v7, %v42_v6  ;;  %v999_v11 = vld [vmem:[%s1416_s3 + $0x64] ss:$8 sps:$4 sm:$0xff]   ;;  %v997_v12 = vld [vmem:[%s1416_s3 + $0x60] ss:$8 sps:$4 sm:$0xff]   ;;  %v1000_v14 = vld [vmem:[%s1416_s3 + $0x50] ss:$8 sps:$4 sm:$0xff]  }
   0x7   :  { %99 = vmatprep.subr.bf16.mxu1 %v991_v4  ;;  %v1005_v15 = vld [vmem:[%s1416_s3 + $0x44] ss:$8 sps:$4 sm:$0xff]   ;;  %v1003_v16 = vld [vmem:[%s1416_s3 + $0x40] ss:$8 sps:$4 sm:$0xff]   ;;  %v1008_v17 = vld [vmem:[%s1416_s3 + $0x34] ss:$8 sps:$4 sm:$0xff]  }
   0x8   :  { %v1006_v18 = vld [vmem:[%s1416_s3 + $0x30] ss:$8 sps:$4 sm:$0xff]   ;;  %v1011_v19 = vld [vmem:[%s1416_s3 + $0x24] ss:$8 sps:$4 sm:$0xff]   ;;  %v1009_v20 = vld [vmem:[%s1416_s3 + $0x20] ss:$8 sps:$4 sm:$0xff]  }
   0x9   :  { %v1014_v21 = vld [vmem:[%s1416_s3 + $0x14] ss:$8 sps:$4 sm:$0xff]   ;;  %v1012_v22 = vld [vmem:[%s1416_s3 + $0x10] ss:$8 sps:$4 sm:$0xff]   ;;  %v1017_v23 = vld [vmem:[%s1416_s3 + $0x4] ss:$8 sps:$4 sm:$0xff]  }
   0xa   :  { %100 = vmatpush1.bf16.msra.mxu1 %v993_v5  ;;  %v1015_v24 = vld [vmem:[%s1416_s3] ss:$8 sps:$4 sm:$0xff]   ;;  %v1020_v25 = vld [vmem:[%s1416_s3 + $0xf4] ss:$8 sps:$4 sm:$0xff]  }
   0xb   :  { %334 = vmatprep.subr.bf16.mxu1 %v996_v8 }
   0xd   :  { %889 = vmatmul.mubr.msk.bf16.vlgmr.msra.gmra.mxu1 %vm81_vm0, %v44_v9 }
   0xe   :  { %335 = vmatpush1.bf16.msra.mxu1 %v994_v10 }
   0xf   :  { %336 = vmatprep.subr.bf16.mxu1 %v999_v11 }
  0x12   :  { %337 = vmatpush1.bf16.msra.mxu1 %v997_v12 }
  0x13   :  { %338 = vmatprep.subr.bf16.mxu1 %v1002_v13 }
  0x16   :  { %339 = vmatpush1.bf16.msra.mxu1 %v1000_v14 }
  0x17   :  { %340 = vmatprep.subr.bf16.mxu1 %v1005_v15 }
  0x1a   :  { %341 = vmatpush1.bf16.msra.mxu1 %v1003_v16 }
  0x1b   :  { %342 = vmatprep.subr.bf16.mxu1 %v1008_v17 }
  0x1e   :  { %343 = vmatpush1.bf16.msra.mxu1 %v1006_v18 }
  0x1f   :  { %344 = vmatprep.subr.bf16.mxu1 %v1011_v19 }
  0x22   :  { %345 = vmatpush1.bf16.msra.mxu1 %v1009_v20 }
  0x23   :  { %346 = vmatprep.subr.bf16.mxu1 %v1014_v21 }
  0x26   :  { %347 = vmatpush1.bf16.msra.mxu1 %v1012_v22 }
  0x27   :  { %348 = vmatprep.subr.bf16.mxu1 %v1017_v23 }
  0x28   :  { %18 = vsyncpa [#allocation4], 0  ;;  %v1018_v26 = vld [vmem:[%s1416_s3 + $0xf0] ss:$8 sps:$4 sm:$0xff]   ;;  %v1023_v27 = vld [vmem:[%s1416_s3 + $0xe4] ss:$8 sps:$4 sm:$0xff]   ;;  %v51_v41 = vlaneseq }
  0x29   :  { %v1021_v28 = vld [vmem:[%s1416_s3 + $0xe0] ss:$8 sps:$4 sm:$0xff]   ;;  %v1026_v29 = vld [vmem:[%s1416_s3 + $0xd4] ss:$8 sps:$4 sm:$0xff]   ;;  %v1024_v30 = vld [vmem:[%s1416_s3 + $0xd0] ss:$8 sps:$4 sm:$0xff]  }
  0x2a   :  { %349 = vmatpush1.bf16.msra.mxu1 %v1015_v24  ;;  %v1029_v31 = vld [vmem:[%s1416_s3 + $0xc4] ss:$8 sps:$4 sm:$0xff]   ;;  %v1027_v32 = vld [vmem:[%s1416_s3 + $0xc0] ss:$8 sps:$4 sm:$0xff]   ;;  %v1032_v33 = vld [vmem:[%s1416_s3 + $0xb4] ss:$8 sps:$4 sm:$0xff]  }
  0x2b   :  { %350 = vmatprep.subr.bf16.mxu1 %v1020_v25  ;;  %v1030_v34 = vld [vmem:[%s1416_s3 + $0xb0] ss:$8 sps:$4 sm:$0xff]   ;;  %v1035_v35 = vld [vmem:[%s1416_s3 + $0xa4] ss:$8 sps:$4 sm:$0xff]   ;;  %v1033_v36 = vld [vmem:[%s1416_s3 + $0xa0] ss:$8 sps:$4 sm:$0xff]  }
  0x2c   :  { %v1038_v37 = vld [vmem:[%s1416_s3 + $0x94] ss:$8 sps:$4 sm:$0xff]   ;;  %v1036_v38 = vld [vmem:[%s1416_s3 + $0x90] ss:$8 sps:$4 sm:$0xff]   ;;  %v1041_v39 = vld [vmem:[%s1416_s3 + $0x84] ss:$8 sps:$4 sm:$0xff]  }
  0x2d   :  { %v1039_v40 = vld [vmem:[%s1416_s3 + $0x80] ss:$8 sps:$4 sm:$0xff]   ;;  %v52_v42 = vshrl.u32 %v51_v41, 7  ;;  %v1042_v58 = vld [vmem:[%s1418_s5 + $0x38] sm:$0xff]   ;;  %v1043_v59 = vld [vmem:[%s1418_s5 + $0x30] sm:$0xff]   ;;  %vm413_vm1 = vcmask 523264  }
  0x2e   :  { %351 = vmatpush2.bf16.msra.mxu1 %v1018_v26  ;;  %v49_v46 = vld [vmem:[%s1415_s2] sm:$0x3]  ;;  %564 = vmatpush1.bf16.msra.mxu0 %v1042_v58  ;;  %v1044_v60 = vld [vmem:[%s1418_s5 + $0x28] sm:$0xff]   ;;  %vm1114_vm2 = vmmov 0   ;;  %s1115_s10 = smov [#allocation3]   ;;  %vm869_vm3 = vcmask 122880  }
  0x2f   :  { %352 = vmatprep.subr.bf16.mxu1 %v1023_v27  ;;  %v57_v43 = vsub.s32 1, %v52_v42  ;;  %v1296_v44 = vsub.s32 0, %v52_v42  ;;  %565 = vmatprep.subr.bf16.mxu0 %v1112_v3  ;;  %v1045_v61 = vld [vmem:[%s1418_s5 + $0x20] sm:$0xff]   ;;  %s877_s25 = sshll.u32 %s1115_s10, 4  ;;  %s878_s25 = int_to_ptr.vmem [resolvable:$true] %s877_s25 }
  0x30   :  { %v162_v62 = vld [vmem:[%s1417_s4] sm:$0x3]  ;;  %s1090_s26 = scalar_lea.vmem %s878_s25, 16  ;;  %s1094_s27 = scalar_lea.vmem %s878_s25, 32 }
  0x31   :  { %v58_v48 = vrot.slane %v49_v46, %v57_v43  ;;  %v54_v49 = vrot.slane %v49_v46, %v1296_v44  ;;  %v167_v63 = vrot.slane %v162_v62, %v1296_v44  ;;  %v171_v0 = vrot.slane %v162_v62, %v57_v43  ;;  %v1049_v62 = vld [vmem:[%s1418_s5] sm:$0xff]   ;;  %p1091_p0 = scmp.ne.s32.totalorder %s878_s25, %s1090_s26  ;;  %p1095_p1 = scmp.lt.s32.totalorder %s878_s25, %s878_s25 }
  0x32   :  { %353 = vmatpush2.bf16.msra.mxu1 %v1021_v28  ;;  %566 = vmatpush1.bf16.msra.mxu0 %v1043_v59  ;;  %v1046_v59 = vld [vmem:[%s1418_s5 + $0x18] sm:$0xff]   ;;  %p1096_p2 = scmp.lt.s32.totalorder %s1094_s27, %s1090_s26 }
  0x33   :  { %354 = vmatprep.subr.bf16.mxu1 %v1026_v29  ;;  %567 = vmatprep.subr.bf16.mxu0 %v1112_v3 }
  0x34   :  { %p1097_p3 = por %p1096_p2, %p1095_p1 }
  0x36   :  { %355 = vmatpush2.bf16.msra.mxu1 %v1024_v30  ;;  %568 = vmatpush1.bf16.msra.mxu0 %v1044_v60  ;;  %v1047_v60 = vld [vmem:[%s1418_s5 + $0x10] sm:$0xff]   ;;  %p1098_p4 = pnand %p1097_p3, %p1091_p0 }
  0x37   :  { %356 = vmatprep.subr.bf16.mxu1 %v1029_v31  ;;  %569 = vmatprep.subr.bf16.mxu0 %v1112_v3 }
  0x3a   :  { %357 = vmatpush2.bf16.msra.mxu1 %v1027_v32  ;;  %570 = vmatpush1.bf16.msra.mxu0 %v1045_v61  ;;  %v1048_v61 = vld [vmem:[%s1418_s5 + $0x8] sm:$0xff]  }
  0x3b   :  { %358 = vmatprep.subr.bf16.mxu1 %v1032_v33  ;;  %571 = vmatprep.subr.bf16.mxu0 %v1112_v3 }
  0x3e   :  { %359 = vmatpush2.bf16.msra.mxu1 %v1030_v34  ;;  %572 = vmatpush1.bf16.msra.mxu0 %v1046_v59  ;;  %v1055_v59 = vld [vmem:[%s1420_s7 + $0x30] sm:$0xff]  }
  0x3f   :  { %360 = vmatprep.subr.bf16.mxu1 %v1035_v35  ;;  %573 = vmatprep.subr.bf16.mxu0 %v1112_v3 }
  0x42   :  { %361 = vmatpush2.bf16.msra.mxu1 %v1033_v36  ;;  %574 = vmatpush1.bf16.msra.mxu0 %v1047_v60  ;;  %v1056_v60 = vld [vmem:[%s1420_s7 + $0x28] sm:$0xff]  }
  0x43   :  { %362 = vmatprep.subr.bf16.mxu1 %v1038_v37  ;;  %575 = vmatprep.subr.bf16.mxu0 %v1112_v3 }
  0x46   :  { %363 = vmatpush2.bf16.msra.mxu1 %v1036_v38  ;;  %576 = vmatpush1.bf16.msra.mxu0 %v1048_v61  ;;  %v1057_v61 = vld [vmem:[%s1420_s7 + $0x20] sm:$0xff]  }
  0x47   :  { %364 = vmatprep.subr.bf16.mxu1 %v1041_v39  ;;  %577 = vmatprep.subr.bf16.mxu0 %v1112_v3 }
  0x4a   :  { %365 = vmatpush2.bf16.msra.mxu1 %v1039_v40  ;;  %578 = vmatpush1.bf16.msra.mxu0 %v1049_v62  ;;  %v1058_v62 = vld [vmem:[%s1420_s7 + $0x18] sm:$0xff]  }
  0x4b   :  { %587 = vmatprep.subr.bf16.mxu0 %v1112_v3 }
  0xcd   :  { %v119_v45 = vpop.f32.mrf.mxu1 }
  0xce   :  { %v120_v55 = vadd.f32 %v119_v45, %v54_v49 }
  0xcf   :  { %v121_v47 = vpop.f32.mrf.mxu1 }
  0xd0   :  { %v122_v53 = vadd.f32 %v121_v47, %v58_v48 }
  0xd1   :  { %v123_v50 = vpop.f32.mrf.mxu1 }
  0xd2   :  { %v124_v51 = vadd.f32 %v123_v50, %v54_v49 }
  0xd3   :  { %v125_v52 = vpop.f32.mrf.mxu1 }
  0xd4   :  { %v126_v54 = vadd.f32 %v125_v52, %v58_v48  ;;  %v128_v57 = vpack.c.bf16 %v124_v51, %v120_v55 }
  0xd6   :  { %v129_v56 = vpack.c.bf16 %v126_v54, %v122_v53 }
  0xd8   :  { %366 = vmatprep.mubr.bf16.mxu1 %v129_v56 }
  0xd9   :  { %367 = vmatmul.mubr.bf16.vlgmr.msra.gmra.mxu1 %v128_v57 }
 0x199   :  { %v368_v1 = vpop.f32.mrf.mxu1 }
 0x19a   :  { %v369_v2 = vadd.f32 %v368_v1, %v167_v63  ;;  %v1052_v1 = vld [vmem:[%s1418_s5 + $0x48] sm:$0xff]  }
 0x19b   :  { %v370_v4 = vpop.f32.mrf.mxu1 }
 0x19c   :  { %v381_v5 = vmul.f32 %v369_v2, %v369_v2  ;;  %v371_v6 = vadd.f32 %v370_v4, %v171_v0  ;;  %v377_v33 = vmul.f32 0.5, %v369_v2 }
 0x19d   :  { %v372_v7 = vpop.f32.mrf.mxu1 }
 0x19e   :  { %v385_v8 = vmul.f32 %v381_v5, %v369_v2  ;;  %v382_v9 = vmul.f32 %v371_v6, %v371_v6  ;;  %v373_v10 = vadd.f32 %v372_v7, %v167_v63  ;;  %v378_v34 = vmul.f32 0.5, %v371_v6  ;;  %v1050_v63 = vld [vmem:[%s1418_s5 + $0x58] sm:$0xff]  }
 0x19f   :  { %v374_v11 = vpop.f32.mrf.mxu1  ;;  %588 = vmatpush2.bf16.msra.mxu0 %v1050_v63  ;;  %v1059_v63 = vld [vmem:[%s1420_s7 + $0x10] sm:$0xff]  }
 0x1a0   :  { %v389_v12 = vmul.f32 0.044715, %v385_v8  ;;  %v386_v13 = vmul.f32 %v382_v9, %v371_v6  ;;  %v383_v14 = vmul.f32 %v373_v10, %v373_v10  ;;  %v375_v15 = vadd.f32 %v374_v11, %v171_v0  ;;  %v1051_v0 = vld [vmem:[%s1418_s5 + $0x50] sm:$0xff]   ;;  %589 = vmatprep.subr.bf16.mxu0 %v1112_v3 }
 0x1a1   :  { %v379_v43 = vmul.f32 0.5, %v373_v10 }
 0x1a2   :  { %v393_v16 = vadd.f32 %v389_v12, %v369_v2  ;;  %v390_v17 = vmul.f32 0.044715, %v386_v13  ;;  %v387_v18 = vmul.f32 %v383_v14, %v373_v10  ;;  %v384_v19 = vmul.f32 %v375_v15, %v375_v15  ;;  %v1053_v2 = vld [vmem:[%s1418_s5 + $0x40] sm:$0xff]  }
 0x1a3   :  { %v380_v45 = vmul.f32 0.5, %v375_v15  ;;  %590 = vmatpush2.bf16.msra.mxu0 %v1051_v0  ;;  %v1060_v0 = vld [vmem:[%s1420_s7 + $0x8] sm:$0xff]  }
 0x1a4   :  { %v397_v20 = vmul.f32 0.7978846, %v393_v16  ;;  %v394_v21 = vadd.f32 %v390_v17, %v371_v6  ;;  %v391_v22 = vmul.f32 0.044715, %v387_v18  ;;  %v388_v23 = vmul.f32 %v384_v19, %v375_v15  ;;  %591 = vmatprep.subr.bf16.mxu0 %v1112_v3 }
 0x1a6   :  { %1062 = vtanh.f32 %v397_v20  ;;  %v398_v24 = vmul.f32 0.7978846, %v394_v21  ;;  %v395_v25 = vadd.f32 %v391_v22, %v373_v10  ;;  %v392_v26 = vmul.f32 0.044715, %v388_v23 }
 0x1a7   :  { %592 = vmatpush2.bf16.msra.mxu0 %v1052_v1  ;;  %v1061_v1 = vld [vmem:[%s1420_s7] sm:$0xff]  }
 0x1a8   :  { %1064 = vtanh.f32 %v398_v24  ;;  %v399_v27 = vmul.f32 0.7978846, %v395_v25  ;;  %v396_v28 = vadd.f32 %v392_v26, %v375_v15  ;;  %593 = vmatprep.subr.bf16.mxu0 %v1112_v3 }
 0x1aa   :  { %1066 = vtanh.f32 %v399_v27  ;;  %v400_v29 = vmul.f32 0.7978846, %v396_v28 }
 0x1ab   :  { %594 = vmatpush2.bf16.msra.mxu0 %v1053_v2 }
 0x1ac   :  { %1068 = vtanh.f32 %v400_v29  ;;  %v922_v29 = vld [vmem:[%s1419_s6] ss:$0 sm:$0xff] }
 0x1b3   :  { %v1063_v30 = vpop.eup %1062 }
 0x1b4   :  { %v405_v31 = vadd.f32 1.0, %v1063_v30 }
 0x1b5   :  { %v1065_v32 = vpop.eup %1064 }
 0x1b6   :  { %v406_v35 = vadd.f32 1.0, %v1065_v32  ;;  %v1322_v37 = vmul.f32 %v405_v31, %v377_v33 }
 0x1b7   :  { %v1067_v36 = vpop.eup %1066 }
 0x1b8   :  { %v1324_v38 = vmul.f32 %v406_v35, %v378_v34  ;;  %v407_v39 = vadd.f32 1.0, %v1067_v36  ;;  %v425_v47 = vmul.f32 %v1322_v37, %v1322_v37 }
 0x1b9   :  { %v1069_v40 = vpop.eup %1068 }
 0x1ba   :  { %v414_v41 = vsel %vm413_vm1, %v1324_v38, 0.0  ;;  %v426_v42 = vmul.f32 %v1324_v38, %v1324_v38  ;;  %v408_v48 = vadd.f32 1.0, %v1069_v40  ;;  %v411_v50 = vmul.f32 %v407_v39, %v379_v43 }
 0x1bb   :  { %v415_v46 = vadd.f32 %v414_v41, %v1322_v37 }
 0x1bc   :  { %v429_v49 = vsel %vm413_vm1, %v426_v42, 0.0  ;;  %v412_v52 = vmul.f32 %v408_v48, %v380_v45  ;;  %v427_v56 = vmul.f32 %v411_v50, %v411_v50 }
 0x1bd   :  { %416 = vadd.xlane.f32.xlu0 %v415_v46  ;;  %v430_v51 = vadd.f32 %v429_v49, %v425_v47 }
 0x1be   :  { %v418_v53 = vsel %vm413_vm1, %v412_v52, 0.0  ;;  %v428_v54 = vmul.f32 %v412_v52, %v412_v52 }
 0x1bf   :  { %431 = vadd.xlane.f32.xlu1 %v430_v51  ;;  %v419_v55 = vadd.f32 %v418_v53, %v411_v50 }
 0x1c0   :  { %v433_v57 = vsel %vm413_vm1, %v428_v54, 0.0 }
 0x1c1   :  { %420 = vadd.xlane.f32.xlu0 %v419_v55  ;;  %v434_v58 = vadd.f32 %v433_v57, %v427_v56  ;;  %v1054_v57 = vld [vmem:[%s1420_s7 + $0x38] sm:$0xff]  }
 0x1c3   :  { %435 = vadd.xlane.f32.xlu1 %v434_v58  ;;  %v1113_v58 = vmov 0.0  }
 0x1c4   :  { %957 = vmatprep.subr.bf16.mxu0 %v1113_v58  ;;  %977 = vmatprep.subr.bf16.mxu1 %v1113_v58 }
 0x1c5   :  { %979 = vmatprep.mubr.msk.bf16.mxu1 %vm1114_vm2, %v1113_v58 }
 0x246   :  { %v417_v4 = vpop.xlane.xlu0 %416 }
 0x247   :  { %v423_v5 = vmul.f32 0.0052083335, %v417_v4 }
 0x248   :  { %v432_v6 = vpop.xlane.xlu1 %431 }
 0x249   :  { %v437_v7 = vmul.f32 0.0052083335, %v432_v6  ;;  %v439_v8 = vmul.f32 %v423_v5, %v423_v5  ;;  %v447_v3 = vsub.f32 %v1322_v37, %v423_v5  ;;  %v448_v19 = vsub.f32 %v1324_v38, %v423_v5 }
 0x24a   :  { %v421_v10 = vpop.xlane.xlu0 %420 }
 0x24b   :  { %v441_v9 = vsub.f32 %v437_v7, %v439_v8  ;;  %v424_v11 = vmul.f32 0.0052083335, %v421_v10 }
 0x24c   :  { %v436_v12 = vpop.xlane.xlu1 %435 }
 0x24d   :  { %v443_v13 = vadd.f32 1e-05, %v441_v9  ;;  %v438_v14 = vmul.f32 0.0052083335, %v436_v12  ;;  %v440_v15 = vmul.f32 %v424_v11, %v424_v11  ;;  %v449_v20 = vsub.f32 %v411_v50, %v424_v11 }
 0x24e   :  { %v450_v21 = vsub.f32 %v412_v52, %v424_v11 }
 0x24f   :  { %v442_v16 = vsub.f32 %v438_v14, %v440_v15  ;;  %1070 = vrsqrt.f32 %v443_v13 }
 0x251   :  { %v444_v17 = vadd.f32 1e-05, %v442_v16 }
 0x253   :  { %1072 = vrsqrt.f32 %v444_v17 }
 0x25c   :  { %v1071_v18 = vpop.eup %1070 }
 0x25d   :  { %v452_v23 = vmul.f32 %v1071_v18, %v448_v19  ;;  %v451_v25 = vmul.f32 %v1071_v18, %v447_v3 }
 0x260   :  { %v1073_v22 = vpop.eup %1072 }
 0x261   :  { %v454_v24 = vmul.f32 %v1073_v22, %v450_v21  ;;  %v453_v26 = vmul.f32 %v1073_v22, %v449_v20 }
 0x263   :  { %v456_v27 = vpack.c.bf16 %v454_v24, %v452_v23  ;;  %v455_v28 = vpack.c.bf16 %v453_v26, %v451_v25  ;;  %v936_v23 = vld [vmem:[%s1421_s8] ss:$0 sm:$0xff] }
 0x265   :  { %935 = vmatprep.mubr.msk.bf16.mxu0 %vm413_vm1, %v456_v27 }
 0x266   :  { %596 = vmatmul.mubr.bf16.vlgmr.msra.gmra.mxu0 %v455_v28 }
 0x267   :  { %958 = vmatpush3.bf16.msra.mxu0 %v1054_v57  ;;  %973 = vmatprep.mubr.msk.bf16.mxu0 %vm1114_vm2, %v1113_v58 }
 0x268   :  { %959 = vmatprep.subr.bf16.mxu0 %v1113_v58 }
 0x26b   :  { %960 = vmatpush3.bf16.msra.mxu0 %v1055_v59 }
 0x26c   :  { %961 = vmatprep.subr.bf16.mxu0 %v1113_v58 }
 0x26f   :  { %962 = vmatpush3.bf16.msra.mxu0 %v1056_v60 }
 0x270   :  { %963 = vmatprep.subr.bf16.mxu0 %v1113_v58 }
 0x273   :  { %964 = vmatpush3.bf16.msra.mxu0 %v1057_v61 }
 0x274   :  { %965 = vmatprep.subr.bf16.mxu0 %v1113_v58 }
 0x277   :  { %966 = vmatpush3.bf16.msra.mxu0 %v1058_v62 }
 0x278   :  { %967 = vmatprep.subr.bf16.mxu0 %v1113_v58 }
 0x27b   :  { %968 = vmatpush3.bf16.msra.mxu0 %v1059_v63 }
 0x27c   :  { %969 = vmatprep.subr.bf16.mxu0 %v1113_v58 }
 0x27f   :  { %970 = vmatpush3.bf16.msra.mxu0 %v1060_v0 }
 0x280   :  { %971 = vmatprep.subr.bf16.mxu0 %v1113_v58 }
 0x283   :  { %972 = vmatpush3.bf16.msra.mxu0 %v1061_v1 }
 0x326   :  { %v597_v30 = vpop.f32.mrf.mxu0 }
 0x327   :  { %v598_v31 = vadd.f32 %v922_v29, %v597_v30 }
 0x328   :  { %v599_v32 = vpop.f32.mrf.mxu0 }
 0x329   :  { %v606_v33 = vmul.f32 %v598_v31, %v598_v31  ;;  %v604_v48 = vmul.f32 0.5, %v598_v31 }
 0x32a   :  { %v600_v34 = vpop.f32.mrf.mxu0 }
 0x32b   :  { %v608_v35 = vmul.f32 %v606_v33, %v598_v31  ;;  %v601_v36 = vadd.f32 %v922_v29, %v600_v34 }
 0x32c   :  { %v602_v37 = vpop.f32.mrf.mxu0 }
 0x32d   :  { %v610_v38 = vmul.f32 0.044715, %v608_v35  ;;  %v607_v39 = vmul.f32 %v601_v36, %v601_v36  ;;  %v605_v52 = vmul.f32 0.5, %v601_v36 }
 0x32f   :  { %v612_v40 = vadd.f32 %v610_v38, %v598_v31  ;;  %v609_v41 = vmul.f32 %v607_v39, %v601_v36 }
 0x331   :  { %v614_v42 = vmul.f32 0.7978846, %v612_v40  ;;  %v611_v43 = vmul.f32 0.044715, %v609_v41 }
 0x333   :  { %v613_v45 = vadd.f32 %v611_v43, %v601_v36  ;;  %1074 = vtanh.f32 %v614_v42 }
 0x335   :  { %v615_v46 = vmul.f32 0.7978846, %v613_v45 }
 0x337   :  { %1076 = vtanh.f32 %v615_v46 }
 0x340   :  { %v1075_v47 = vpop.eup %1074 }
 0x341   :  { %v618_v49 = vadd.f32 1.0, %v1075_v47 }
 0x343   :  { %v620_v50 = vmul.f32 %v618_v49, %v604_v48 }
 0x344   :  { %v1077_v51 = vpop.eup %1076 }
 0x345   :  { %622 = vadd.xlane.f32.xlu0 %v620_v50  ;;  %v619_v53 = vadd.f32 1.0, %v1077_v51  ;;  %v629_v55 = vmul.f32 %v620_v50, %v620_v50 }
 0x347   :  { %v621_v54 = vmul.f32 %v619_v53, %v605_v52 }
 0x349   :  { %624 = vadd.xlane.f32.xlu1 %v621_v54  ;;  %631 = vadd.xlane.f32.xlu0 %v629_v55  ;;  %v630_v56 = vmul.f32 %v621_v54, %v621_v54  ;;  %v813_v55 = vld [vmem:[#allocation2] sm:$0x1] }
 0x34d   :  { %633 = vadd.xlane.f32.xlu1 %v630_v56 }
 0x3ce   :  { %v623_v2 = vpop.xlane.xlu0 %622 }
 0x3cf   :  { %v627_v4 = vmul.f32 0.0078125, %v623_v2 }
 0x3d1   :  { %v637_v7 = vmul.f32 %v627_v4, %v627_v4  ;;  %v645_v18 = vsub.f32 %v620_v50, %v627_v4 }
 0x3d2   :  { %v625_v5 = vpop.xlane.xlu1 %624  ;;  %v632_v6 = vpop.xlane.xlu0 %631 }
 0x3d3   :  { %v628_v8 = vmul.f32 0.0078125, %v625_v5  ;;  %v635_v9 = vmul.f32 0.0078125, %v632_v6 }
 0x3d5   :  { %v639_v10 = vsub.f32 %v635_v9, %v637_v7  ;;  %v638_v12 = vmul.f32 %v628_v8, %v628_v8  ;;  %v646_v3 = vsub.f32 %v621_v54, %v628_v8 }
 0x3d6   :  { %v634_v11 = vpop.xlane.xlu1 %633 }
 0x3d7   :  { %v641_v13 = vadd.f32 1e-05, %v639_v10  ;;  %v636_v14 = vmul.f32 0.0078125, %v634_v11 }
 0x3d9   :  { %v640_v15 = vsub.f32 %v636_v14, %v638_v12  ;;  %1078 = vrsqrt.f32 %v641_v13 }
 0x3db   :  { %v642_v16 = vadd.f32 1e-05, %v640_v15  ;;  %v812_v15 = vld [vmem:[%s1422_s9] sm:$0x1] }
 0x3dd   :  { %1080 = vrsqrt.f32 %v642_v16 }
 0x3e6   :  { %v1079_v17 = vpop.eup %1078 }
 0x3e7   :  { %v647_v20 = vmul.f32 %v1079_v17, %v645_v18 }
 0x3ea   :  { %v1081_v19 = vpop.eup %1080 }
 0x3eb   :  { %v648_v21 = vmul.f32 %v1081_v19, %v646_v3 }
 0x3ed   :  { %v649_v22 = vpack.c.bf16 %v648_v21, %v647_v20 }
 0x3ef   :  { %974 = vmatmul.mubr.bf16.vlgmr.msra.gmra.mxu0 %v649_v22 }
 0x4af   :  { %v755_v24 = vpop.f32.mrf.mxu0 }
 0x4b0   :  { %v756_v25 = vadd.f32 %v936_v23, %v755_v24 }
 0x4b1   :  { %v975_v26 = vpop.f32.mrf.mxu0 }
 0x4b2   :  { %v764_v27 = vmul.f32 %v756_v25, %v756_v25  ;;  %v762_v41 = vmul.f32 0.5, %v756_v25 }
 0x4b3   :  { %v758_v28 = vpop.f32.mrf.mxu0 }
 0x4b4   :  { %v766_v29 = vmul.f32 %v764_v27, %v756_v25  ;;  %v759_v30 = vadd.f32 %v936_v23, %v758_v28 }
 0x4b5   :  { %v976_v31 = vpop.f32.mrf.mxu0 }
 0x4b6   :  { %v768_v32 = vmul.f32 0.044715, %v766_v29  ;;  %v765_v33 = vmul.f32 %v759_v30, %v759_v30  ;;  %v763_v48 = vmul.f32 0.5, %v759_v30 }
 0x4b8   :  { %v770_v34 = vadd.f32 %v768_v32, %v756_v25  ;;  %v767_v35 = vmul.f32 %v765_v33, %v759_v30 }
 0x4ba   :  { %v772_v36 = vmul.f32 0.7978846, %v770_v34  ;;  %v769_v37 = vmul.f32 0.044715, %v767_v35 }
 0x4bc   :  { %1082 = vtanh.f32 %v772_v36  ;;  %v771_v38 = vadd.f32 %v769_v37, %v759_v30 }
 0x4be   :  { %v773_v39 = vmul.f32 0.7978846, %v771_v38 }
 0x4c0   :  { %1084 = vtanh.f32 %v773_v39 }
 0x4c9   :  { %v1083_v40 = vpop.eup %1082 }
 0x4ca   :  { %v776_v42 = vadd.f32 1.0, %v1083_v40 }
 0x4cc   :  { %v778_v43 = vmul.f32 %v776_v42, %v762_v41 }
 0x4cd   :  { %v1085_v45 = vpop.eup %1084 }
 0x4ce   :  { %v780_v46 = vsel %vm413_vm1, %v778_v43, 0.0  ;;  %v789_v47 = vmul.f32 %v778_v43, %v778_v43  ;;  %v777_v49 = vadd.f32 1.0, %v1085_v45 }
 0x4cf   :  { %781 = vadd.xlane.f32.xlu0 %v780_v46 }
 0x4d0   :  { %v779_v50 = vmul.f32 %v777_v49, %v763_v48  ;;  %v791_v51 = vsel %vm413_vm1, %v789_v47, 0.0 }
 0x4d2   :  { %v783_v52 = vsel %vm413_vm1, %v779_v50, 0.0  ;;  %v790_v53 = vmul.f32 %v779_v50, %v779_v50 }
 0x4d3   :  { %792 = vadd.xlane.f32.xlu0 %v791_v51  ;;  %784 = vadd.xlane.f32.xlu1 %v783_v52 }
 0x4d4   :  { %v794_v54 = vsel %vm413_vm1, %v790_v53, 0.0 }
 0x4d7   :  { %795 = vadd.xlane.f32.xlu1 %v794_v54 }
 0x4e9   :  { %816 = vperm.xlu0 %987, %v813_v55  }
 0x558   :  { %v782_v56 = vpop.xlane.xlu0 %781 }
 0x559   :  { %v787_v57 = vmul.f32 0.015625, %v782_v56 }
 0x55b   :  { %v799_v60 = vmul.f32 %v787_v57, %v787_v57  ;;  %v807_v8 = vsub.f32 %v778_v43, %v787_v57 }
 0x55c   :  { %v793_v58 = vpop.xlane.xlu0 %792  ;;  %v785_v59 = vpop.xlane.xlu1 %784 }
 0x55d   :  { %v797_v61 = vmul.f32 0.015625, %v793_v58  ;;  %v788_v62 = vmul.f32 0.015625, %v785_v59 }
 0x55f   :  { %v801_v63 = vsub.f32 %v797_v61, %v799_v60  ;;  %v800_v2 = vmul.f32 %v788_v62, %v788_v62  ;;  %v808_v9 = vsub.f32 %v779_v50, %v788_v62 }
 0x560   :  { %v796_v0 = vpop.xlane.xlu1 %795 }
 0x561   :  { %v803_v1 = vadd.f32 1e-05, %v801_v63  ;;  %v798_v4 = vmul.f32 0.015625, %v796_v0 }
 0x563   :  { %v802_v5 = vsub.f32 %v798_v4, %v800_v2  ;;  %1086 = vrsqrt.f32 %v803_v1 }
 0x564   :  { %v817_v16 = vpop.permute.xlu0 %816 }
 0x565   :  { %v804_v6 = vadd.f32 1e-05, %v802_v5  ;;  %v822_v17 = vrot.slane %v817_v16, %v1296_v44 }
 0x567   :  { %1088 = vrsqrt.f32 %v804_v6 }
 0x570   :  { %v1087_v7 = vpop.eup %1086 }
 0x571   :  { %v809_v11 = vmul.f32 %v1087_v7, %v807_v8 }
 0x574   :  { %v1089_v10 = vpop.eup %1088 }
 0x575   :  { %v810_v12 = vmul.f32 %v1089_v10, %v808_v9 }
 0x577   :  { %v811_v13 = vpack.c.bf16 %v810_v12, %v809_v11 }
 0x579   :  { %v827_v14 = vsel %vm413_vm1, %v811_v13, 0 }
 0x57a   :  { %978 = vmatpush3.bf16.xpose.msra.mxu1 %v827_v14 }
 0x581   :  { %980 = vmatmul.mubr.msk.bf16.vlgmr.msra.gmra.mxu1 %vm413_vm1, %v812_v15 }
 0x641   :  { %v863_v18 = vpop.f32.mrf.mxu1 }
 0x642   :  { %v864_v3 = vadd.f32 %v863_v18, %v822_v17 }
 0x643   :  { %v981_v19 = vpop.f32.mrf.mxu1 }
 0x644   :  { %870 = vst.msk [vmem:[#allocation3] sm:$0x1] %vm869_vm3, %v864_v3 }
 0x645   :  { %v866_v20 = vpop.f32.mrf.mxu1 }
 0x646   :  { %1101 = shalt.err (!%p1098_p4)
}
 0x647   :  { %880 = dma.vmem_to_hbm [thread:$0]  %s878_s25, 16, %s1424_s11, [#allocation4]   ;;  %v982_v44 = vpop.f32.mrf.mxu1 }
 0x648   :  { %1110 = dma.done.wait [#allocation4], 16  }
 0x649   :  { %1111 = vsyncadd [#allocation4], 4294967280 }
 0x64a   :  { %884 = vsyncpa [#allocation4], 1 }

</bundles_post_ra>
